<compile_context>
chip_gen: v7x
topology: tpu7x:2x2x1
jax: 0.10.0
libtpu: 0.0.40
codegen_flags: <defaults>
</compile_context>

<pallas_src>
import jax
import jax.numpy as jnp
from jax.experimental import pallas as pl
from jax.experimental.pallas import tpu as pltpu


def _round_up(x, m):
    return ((x + m - 1) // m) * m


def _tpu_budget():
    """Generation-aware VMEM budget / tile caps, inferred from VMEM capacity."""
    try:
        vmem_cap = pltpu.get_tpu_info().vmem_capacity_bytes
    except Exception:  # non-TPU trace or older jax: conservative defaults
        vmem_cap = 64 * 1024 * 1024
    if vmem_cap <= 96 * 1024 * 1024:
        # v7x-class: 64 MiB physical per TensorCore, 2 TCs per chip.
        return {"vmem_limit": 48 * 1024 * 1024, "max_tile_m": 512,
                "split_for_cores": True}
    # v5e / v6e: 128 MiB physical VMEM, single TensorCore.
    return {"vmem_limit": 96 * 1024 * 1024, "max_tile_m": 1024,
            "split_for_cores": False}


def _pick_tile_m(n, max_tile):
    """Largest power-of-two M tile (>=8) whose row padding stays <= ~12.5%."""
    best = 8
    cand = 8
    while cand <= max_tile:
        waste = _round_up(n, cand) - n
        if waste * 8 <= max(n, 8):
            best = cand
        cand *= 2
    return best


# ----------------------------- Pallas kernel ------------------------------ #

def _linear_kernel(x_ref, w_ref, b_ref, o_ref, acc_ref):
    # x_ref: (tile_m, tile_k)  input tile (original dtype; cast to bf16 here)
    # w_ref: (tile_k, tile_n)  bf16 weight tile
    # b_ref: (1, tile_n)       f32 bias row
    # o_ref: (tile_m, tile_n)  f32 output tile (lane-dense)
    # acc_ref: VMEM f32 accumulator, persists across the K grid axis
    @pl.when(pl.program_id(2) == 0)
    def _():
        acc_ref[...] = jnp.zeros_like(acc_ref)

    acc_ref[...] += jnp.dot(
        x_ref[...].astype(jnp.bfloat16), w_ref[...],
        preferred_element_type=jnp.float32)

    @pl.when(pl.program_id(2) == pl.num_programs(2) - 1)
    def _():
        o_ref[...] = (acc_ref[...] + b_ref[...]).astype(o_ref.dtype)


def pallas_linear(x2d, w_packed, b_packed, out_features, *, force_pallas=False):
    """x2d: (N, H) -> (N, O) f32 via x2d @ W + b.

    w_packed: (H, O_pad) bf16 (O_pad = round_up(O, 128)), b_packed: (1, O_pad) f32.
    bf16 MXU operands, f32 accumulation; output dtype is always f32.
    """
    n, h = x2d.shape
    h_w, o_pad = w_packed.shape
    assert h_w == h
    o = out_features

    # Tiny-problem gate: let XLA fuse cast+dot+bias when the custom-call /
    # per-step overhead would dominate.
    if not force_pallas and n * h * o < (1 << 20):
        return (jnp.dot(x2d.astype(jnp.bfloat16), w_packed[:, :o],
                        preferred_element_type=jnp.float32) + b_packed[0, :o])

    budget = _tpu_budget()

    # --- tile selection ----------------------------------------------------
    tile_m = _pick_tile_m(n, budget["max_tile_m"])
    if (budget["split_for_cores"] and tile_m >= 512
            and _round_up(n, tile_m) == tile_m):
        tile_m //= 2  # make grid_m >= 2 so both v7x TensorCores are busy
    n_pad = _round_up(n, tile_m)
    grid_m = n_pad // tile_m

    # Output lane tile: prefer 256+ wide (fills v6e/v7x 256-wide MXU passes),
    # 128 minimum (lane-dense, unmasked stores).
    tile_n = next(c for c in (512, 256, 128) if o_pad % c == 0 and c <= o_pad)
    grid_n = o_pad // tile_n

    # K: keep whole when it comfortably fits VMEM; otherwise split on an
    # MXU-friendly boundary that divides H exactly (no K padding of x).
    if h <= 2048:
        tile_k = h
    else:
        tile_k = next((c for c in (2048, 1024, 512, 256, 128) if h % c == 0), h)
    grid_k = h // tile_k

    # --- operand prep (trace-time branches; no extra HBM passes when aligned)
    x_in = x2d
    if n_pad != n:
        x_in = jnp.zeros((n_pad, h), x2d.dtype).at[:n, :].set(x2d)

    out = pl.pallas_call(
        _linear_kernel,
        out_shape=jax.ShapeDtypeStruct((n_pad, o_pad), jnp.float32),
        grid_spec=pltpu.PrefetchScalarGridSpec(
            num_scalar_prefetch=0,
            grid=(grid_m, grid_n, grid_k),
            in_specs=[
                pl.BlockSpec((tile_m, tile_k), lambda i, j, k: (i, k)),  # x
                pl.BlockSpec((tile_k, tile_n), lambda i, j, k: (k, j)),  # W
                pl.BlockSpec((1, tile_n), lambda i, j, k: (0, j)),       # bias
            ],
            out_specs=pl.BlockSpec((tile_m, tile_n), lambda i, j, k: (i, j)),
            scratch_shapes=[pltpu.VMEM((tile_m, tile_n), jnp.float32)],
        ),
        compiler_params=pltpu.CompilerParams(
            dimension_semantics=("parallel", "parallel", "arbitrary"),
            vmem_limit_bytes=budget["vmem_limit"],
        ),
    )(x_in, w_packed, b_packed)

    if n_pad != n or o_pad != o:
        out = out[:n, :o]
    # Keep f32 (f32-accumulate contract), even if the caller passed bf16 x.
    return out


# -------------------- inner module (returns a dict) ----------------------- #

def make_inner_linear_module(hidden, out_dim, *, force_pallas=False):
    """Deterministic synthetic parameters for the wrapped module.

    Parameters are packed ONCE (bf16 weight zero-padded to a 128-multiple
    output width, f32 bias row) so the per-call kernel boundary is just
    "x in, logits out".
    """
    key = jax.random.PRNGKey(42)
    kw, kb = jax.random.split(key)
    w = (jax.random.normal(kw, (hidden, out_dim), jnp.float32)
         / jnp.sqrt(jnp.float32(hidden)))
    b = 0.01 * jax.random.normal(kb, (out_dim,), jnp.float32)

    o_pad = _round_up(out_dim, 128)
    w_packed = jnp.zeros((hidden, o_pad), jnp.bfloat16).at[:, :out_dim].set(
        w.astype(jnp.bfloat16))
    b_packed = jnp.zeros((1, o_pad), jnp.float32).at[:, :out_dim].set(
        b.reshape(1, out_dim))

    def module_fn(*, x):
        # x: (batch*time, hidden) -> dict of outputs
        return {"logits": pallas_linear(x, w_packed, b_packed, out_dim,
                                        force_pallas=force_pallas)}

    return module_fn


# ----------------------- TimeDistributedDict wrapper ---------------------- #

def time_distributed_dict(module_fn, output_is_dict=True, **inputs):
    """JAX equivalent of TimeDistributedDict.forward(**inputs)."""
    reshaped_inputs = {}
    input_size = None
    for k, t in inputs.items():
        input_size = t.shape
        if len(input_size) <= 2:
            raise RuntimeError("No dimension to distribute: " + str(input_size))
        squashed_shape = (-1,) + tuple(input_size[2:])
        reshaped_inputs[k] = jnp.reshape(t, squashed_shape)

    if not output_is_dict:
        v = module_fn(**reshaped_inputs)
        new_shape = (input_size[0], input_size[1]) + tuple(v.shape[1:])
        return jnp.reshape(v, new_shape)

    reshaped_output_dict = module_fn(**reshaped_inputs)
    outputs = {}
    for k, v in reshaped_output_dict.items():
        new_shape = (input_size[0], input_size[1]) + tuple(v.shape[1:])
        outputs[k] = jnp.reshape(v, new_shape)
    return outputs


# --------------------------------- main ------------------------------------ #

if __name__ == "__main__":
    batch, time_steps, hidden, out_dim = 2, 8, 32, 64

    key = jax.random.PRNGKey(0)
    x = jax.random.normal(key, (batch, time_steps, hidden), jnp.float32)

    # force_pallas=True so the toy shapes exercise the Pallas path (the size
    # gate would otherwise route them to the fused-XLA fallback).
    inner = make_inner_linear_module(hidden, out_dim, force_pallas=True)

    @jax.jit
    def run(x):
        return time_distributed_dict(inner, output_is_dict=True, x=x)

    outputs = run(x)
    jax.block_until_ready(outputs)

    # sanity: shapes / dtype match the TimeDistributedDict + Linear contract
    assert outputs["logits"].shape == (batch, time_steps, out_dim)
    assert outputs["logits"].dtype == jnp.float32

    # reference check against plain JAX with the same bf16-operand / f32-acc
    # recipe (params rebuilt deterministically)
    kref = jax.random.PRNGKey(42)
    kw, kb = jax.random.split(kref)
    w_ref = (jax.random.normal(kw, (hidden, out_dim), jnp.float32)
             / jnp.sqrt(jnp.float32(hidden)))
    b_ref = 0.01 * jax.random.normal(kb, (out_dim,), jnp.float32)
    x2 = x.reshape(-1, hidden)
    expected = (jnp.dot(x2.astype(jnp.bfloat16), w_ref.astype(jnp.bfloat16),
                        preferred_element_type=jnp.float32)
                + b_ref).reshape(batch, time_steps, out_dim)
    assert jnp.allclose(outputs["logits"], expected, atol=2e-2, rtol=2e-2)

    print("KERNEL_OK")
</pallas_src>

<mosaic_0001>
module attributes {stable_mosaic.version = 11 : i64} {
  func.func @_linear_kernel(%arg0: i32, %arg1: i32, %arg2: i32, %arg3: memref<16x32xf32, #tpu.memory_space<vmem>>, %arg4: memref<32x128xbf16, #tpu.memory_space<vmem>>, %arg5: memref<1x128xf32, #tpu.memory_space<vmem>>, %arg6: memref<16x128xf32, #tpu.memory_space<vmem>>, %arg7: memref<16x128xf32, #tpu.memory_space<vmem>>) attributes {dimension_semantics = [#tpu.dimension_semantics<parallel>, #tpu.dimension_semantics<parallel>, #tpu.dimension_semantics<arbitrary>], iteration_bounds = array<i64: 1, 1, 1>, scalar_prefetch = 0 : i64, scratch_operands = 1 : i64, tpu.core_type = #tpu.core_type<tc>, window_params = [{transform_indices = @transform_0, window_bounds = array<i64: 16, 32>}, {transform_indices = @transform_1, window_bounds = array<i64: 32, 128>}, {transform_indices = @transform_2, window_bounds = array<i64: 1, 128>}, {transform_indices = @transform_3, window_bounds = array<i64: 16, 128>}]} {
    %c0_i32 = arith.constant 0 : i32
    %0 = arith.cmpi eq, %arg2, %c0_i32 : i32
    %1 = arith.extui %0 : i1 to i32
    %c0_i32_0 = arith.constant 0 : i32
    %2 = arith.cmpi ne, %1, %c0_i32_0 : i32
    scf.if %2 {
      %cst_10 = arith.constant 0.000000e+00 : f32
      %13 = vector.broadcast %cst_10 : f32 to vector<16x128xf32>
      %c0_11 = arith.constant 0 : index
      %c0_12 = arith.constant 0 : index
      %14 = vector.load %arg7[%c0_11, %c0_12] : memref<16x128xf32, #tpu.memory_space<vmem>>, vector<16x128xf32>
      tpu.vector_store %arg7[%c0_11, %c0_12], %13 {strides = array<i32>} : memref<16x128xf32, #tpu.memory_space<vmem>>, vector<16x128xf32>,
    } else {
    }
    %c0 = arith.constant 0 : index
    %c0_1 = arith.constant 0 : index
    %3 = vector.load %arg7[%c0, %c0_1] : memref<16x128xf32, #tpu.memory_space<vmem>>, vector<16x128xf32>
    %c0_2 = arith.constant 0 : index
    %c0_3 = arith.constant 0 : index
    %4 = vector.load %arg3[%c0_2, %c0_3] : memref<16x32xf32, #tpu.memory_space<vmem>>, vector<16x32xf32>
    %5 = arith.truncf %4 : vector<16x32xf32> to vector<16x32xbf16>
    %c0_4 = arith.constant 0 : index
    %c0_5 = arith.constant 0 : index
    %6 = vector.load %arg4[%c0_4, %c0_5] : memref<32x128xbf16, #tpu.memory_space<vmem>>, vector<32x128xbf16>
    %cst = arith.constant dense<0.000000e+00> : vector<16x128xf32>
    %7 = tpu.matmul %5, %6, %cst {dimension_numbers = #tpu.dot_dimension_numbers<[1], [0], [0], [1], [0, 0, 1, 1], [], []>} : vector<16x32xbf16>, vector<32x128xbf16>, vector<16x128xf32> -> vector<16x128xf32>
    %8 = arith.addf %3, %7 : vector<16x128xf32>
    %c0_6 = arith.constant 0 : index
    %c0_7 = arith.constant 0 : index
    %9 = vector.load %arg7[%c0_6, %c0_7] : memref<16x128xf32, #tpu.memory_space<vmem>>, vector<16x128xf32>
    tpu.vector_store %arg7[%c0_6, %c0_7], %8 {strides = array<i32>} : memref<16x128xf32, #tpu.memory_space<vmem>>, vector<16x128xf32>,
    %c0_i32_8 = arith.constant 0 : i32
    %10 = arith.cmpi eq, %arg2, %c0_i32_8 : i32
    %11 = arith.extui %10 : i1 to i32
    %c0_i32_9 = arith.constant 0 : i32
    %12 = arith.cmpi ne, %11, %c0_i32_9 : i32
    scf.if %12 {
      %c0_10 = arith.constant 0 : index
      %c0_11 = arith.constant 0 : index
      %13 = vector.load %arg7[%c0_10, %c0_11] : memref<16x128xf32, #tpu.memory_space<vmem>>, vector<16x128xf32>
      %c0_12 = arith.constant 0 : index
      %c0_13 = arith.constant 0 : index
      %14 = vector.load %arg5[%c0_12, %c0_13] : memref<1x128xf32, #tpu.memory_space<vmem>>, vector<1x128xf32>
      %15 = vector.broadcast %14 : vector<1x128xf32> to vector<16x128xf32>
      %16 = arith.addf %13, %15 : vector<16x128xf32>
      %c0_14 = arith.constant 0 : index
      %c0_15 = arith.constant 0 : index
      %17 = vector.load %arg6[%c0_14, %c0_15] : memref<16x128xf32, #tpu.memory_space<vmem>>, vector<16x128xf32>
      tpu.vector_store %arg6[%c0_14, %c0_15], %16 {strides = array<i32>} : memref<16x128xf32, #tpu.memory_space<vmem>>, vector<16x128xf32>,
    } else {
    }
    return
  }
  func.func @transform_0(%arg0: i32, %arg1: i32, %arg2: i32) -> (i32, i32) {
    %c0_i32 = arith.constant 0 : i32
    return %arg0, %arg2 : i32, i32
  }
  func.func @transform_1(%arg0: i32, %arg1: i32, %arg2: i32) -> (i32, i32) {
    %c0_i32 = arith.constant 0 : i32
    return %arg2, %arg1 : i32, i32
  }
  func.func @transform_2(%arg0: i32, %arg1: i32, %arg2: i32) -> (i32, i32) {
    %c0_i32 = arith.constant 0 : i32
    %c0_i32_0 = arith.constant 0 : i32
    return %c0_i32, %arg1 : i32, i32
  }
  func.func @transform_3(%arg0: i32, %arg1: i32, %arg2: i32) -> (i32, i32) {
    %c0_i32 = arith.constant 0 : i32
    return %arg0, %arg1 : i32, i32
  }
}

</mosaic_0001>

<bundles_post_ra>
// kernel: run.1
= control target key start
LH: loop header
LB: loop body
LE: loop exit
PB: predicated region body
PF: predicated region fallthrough
CT: control target
= control target key end

     0   :  { %8 = vsyncpa [#allocation4], 0  ;;  %s275_s0 = inlined_call_operand.hbm [shape: f32[16,32], index: 0, kind: input, shape index: {}]   ;;  %s276_s1 = inlined_call_operand.hbm [shape: bf16[32,128], index: 1, kind: input, shape index: {}]   ;;  %s277_s2 = inlined_call_operand.vmem [shape: f32[1,128], index: 2, kind: input, shape index: {}]   ;;  %s278_s3 = inlined_call_operand.vmem [shape: f32[16,128], index: 3, kind: output, shape index: {}]  }
   0x1   :  { %9 = vsyncpa [#allocation6], 0  ;;  %s214_s12 = smov [#allocation3]   ;;  %s166_s16 = scalar_lea.hbm %s275_s0, 256 }
   0x2   :  { %s15_s13 = sshll.u32 %s214_s12, 4  ;;  %p167_p0 = scmp.ne.s32.totalorder %s275_s0, %s166_s16  ;;  %s16_s13 = int_to_ptr.vmem [resolvable:$true] %s15_s13 }
   0x3   :  { %p170_p1 = scmp.lt.u32.totalorder %s166_s16, %s275_s0 }
   0x5   :  { %p172_p2 = pnand %p170_p1, %p167_p0 }
   0x7   :  { %175 = shalt.err (!%p172_p2)
}
   0x8   :  { %s176_s21 = scalar_lea.vmem %s16_s13, 256  ;;  %p181_p4 = scmp.lt.s32.totalorder %s16_s13, %s16_s13 }
   0x9   :  { %p177_p3 = scmp.ne.s32.totalorder %s16_s13, %s176_s21  ;;  %p182_p5 = scmp.lt.s32.totalorder %s176_s21, %s176_s21 }
   0xb   :  { %p183_p6 = por %p182_p5, %p181_p4 }
   0xd   :  { %p184_p7 = pnand %p183_p6, %p177_p3 }
   0xf   :  { %187 = shalt.err (!%p184_p7)
}
  0x10   :  { %s215_s22 = smov 128   ;;  %s216_s23 = smov 8  }
  0x11   :  { %21 = dma.hbm_to_vmem [thread:$0]  %s275_s0, 256, %s16_s13, [#allocation4], %s215_s22, %s215_s22, %s216_s23  }
  0x12   :  { %s217_s26 = smov [#allocation5]   ;;  %s188_s30 = scalar_lea.hbm %s276_s1, 256 }
  0x13   :  { %s27_s27 = sshll.u32 %s217_s26, 4  ;;  %p189_p8 = scmp.ne.s32.totalorder %s276_s1, %s188_s30  ;;  %s28_s27 = int_to_ptr.vmem [resolvable:$true] %s27_s27 }
  0x14   :  { %p192_p9 = scmp.lt.u32.totalorder %s188_s30, %s276_s1 }
  0x16   :  { %p194_p10 = pnand %p192_p9, %p189_p8 }
  0x18   :  { %197 = shalt.err (!%p194_p10)
}
  0x19   :  { %s198_s8 = scalar_lea.vmem %s28_s27, 256  ;;  %p203_p12 = scmp.lt.s32.totalorder %s28_s27, %s28_s27 }
  0x1a   :  { %p199_p11 = scmp.ne.s32.totalorder %s28_s27, %s198_s8  ;;  %p204_p13 = scmp.lt.s32.totalorder %s198_s8, %s198_s8 }
  0x1c   :  { %p205_p0 = por %p204_p13, %p203_p12 }
  0x1e   :  { %p206_p1 = pnand %p205_p0, %p199_p11 }
  0x20   :  { %209 = shalt.err (!%p206_p1)
}
  0x21   :  { %s218_s0 = smov 64   ;;  %s219_s9 = smov 4  }
  0x22   :  { %33 = dma.hbm_to_vmem [thread:$0]  %s276_s1, 256, %s28_s27, [#allocation6], %s218_s0, %s218_s0, %s219_s9  }
  0x23   :  { %210 = dma.done.wait [#allocation4], 256  }
  0x24   :  { %211 = vsyncadd [#allocation4], 4294967040 }
  0x25   :  { %212 = dma.done.wait [#allocation6], 256  }
  0x26   :  { %213 = vsyncadd [#allocation6], 4294967040  ;;  %v220_v0 = vmov 0.0   ;;  %vm221_vm0 = vmmov 0   ;;  %v164_v1 = vld [vmem:[#allocation5] sm:$0xff]   ;;  %v165_v2 = vld [vmem:[#allocation5 + $0x8] sm:$0xff]  }
  0x27   :  { %148 = vmatprep.subr.bf16.mxu0 %v220_v0  ;;  %152 = vmatprep.mubr.msk.bf16.mxu0 %vm221_vm0, %v220_v0  ;;  %v51_v3 = vld [vmem:[#allocation3] sm:$0xff]  ;;  %v52_v4 = vld [vmem:[#allocation3 + $0x8] sm:$0xff]  ;;  %vm70_vm1 = vcmask 261120  }
  0x28   :  { %149 = vmatpush3.bf16.msra.mxu0 %v164_v1  ;;  %v53_v5 = vpack.c.bf16 %v52_v4, %v51_v3  ;;  %v144_v6 = vld [vmem:[%s277_s2] ss:$0 sm:$0xff] }
  0x29   :  { %150 = vmatprep.subr.bf16.mxu0 %v220_v0 }
  0x2c   :  { %151 = vmatpush3.bf16.msra.mxu0 %v165_v2 }
  0x2f   :  { %153 = vmatmul.mubr.msk.bf16.vlgmr.msra.gmra.mrb[0].mxu0 %vm70_vm1, %v53_v5 }
 0x102   :  { %v108_v7 = vpop.f32.mrb[0].mxu0 }
 0x103   :  { %v131_v8 = vadd.f32 %v144_v6, %v108_v7  ;;  %v154_v9 = vpop.f32.mrb[1].mxu0 }
 0x104   :  { %v111_v10 = vpop.f32.mrb[2].mxu0 }
 0x105   :  { %133 = vst [vmem:[%s278_s3] sm:$0xff] %v131_v8  ;;  %v132_v11 = vadd.f32 %v144_v6, %v111_v10  ;;  %v155_v12 = vpop.f32.mrb[3].mxu0 }
 0x107   :  { %134 = vst [vmem:[%s278_s3 + $0x8] sm:$0xff] %v132_v11 }
 0x108   :  { %139 = vsyncpa [#allocation4], 1 }
 0x109   :  { %140 = vsyncpa [#allocation6], 1 }

</bundles_post_ra>
